<compile_context>
chip_gen: v7x
topology: tpu7x:2x2x1
jax: 0.10.0
libtpu: 0.0.40
codegen_flags: <defaults>
</compile_context>

<pallas_src>
import jax
import jax.numpy as jnp
import numpy as np
from jax import lax
from jax.experimental import pallas as pl
from jax.experimental.pallas import tpu as pltpu

EPS = 1e-12  # same eps as torch.nn.functional.normalize
LANES = 128


def solver_kernel(x_ref, dx_ref, X_ref, DX_ref, o_ref, acc_ref):
    """One (3, tile_m, 128) slab of hailstones per grid step.

    x_ref, dx_ref : SMEM (3,)            rock position / unit rock direction
    X_ref, DX_ref : VMEM (3, tile_m, 128) hailstone positions / raw directions
    o_ref         : VMEM (1, 1)           final scalar loss
    acc_ref       : VMEM (tile_m, 128)    elementwise partial sums (scratch)
    """
    step = pl.program_id(0)

    @pl.when(step == 0)
    def _init():
        acc_ref[...] = jnp.zeros_like(acc_ref)

    # Rock parameters: scalars from SMEM, broadcast into the vector ops.
    b0, b1, b2 = dx_ref[0], dx_ref[1], dx_ref[2]
    x0, x1, x2 = x_ref[0], x_ref[1], x_ref[2]

    # Raw hailstone directions (per-row normalization of DX cancels inside
    # normalize(cross(DX, dx)) and is skipped entirely).
    v0 = DX_ref[0]
    v1 = DX_ref[1]
    v2 = DX_ref[2]

    # cross(DX_i, dx)
    c0 = v1 * b2 - v2 * b1
    c1 = v2 * b0 - v0 * b2
    c2 = v0 * b1 - v1 * b0

    # Normal normalization via rsqrt (EUP). Zero-padded rows give c == 0 and
    # therefore contribute exactly 0 to the loss.
    inv_n = lax.rsqrt(c0 * c0 + c1 * c1 + c2 * c2 + EPS)

    # d1 - d2 = <normal, X_i - x>
    diff = (c0 * (X_ref[0] - x0)
            + c1 * (X_ref[1] - x1)
            + c2 * (X_ref[2] - x2)) * inv_n

    acc_ref[...] += diff * diff

    @pl.when(step == pl.num_programs(0) - 1)
    def _finalize():
        o_ref[...] = jnp.sum(acc_ref[...], keepdims=True)


def _coord_major(A, n_pad):
    """(N, 3) -> zero-padded, coordinate-major, lane-dense (3, n_pad//128, 128)."""
    n = A.shape[0]
    Ap = jnp.zeros((n_pad, 3), A.dtype).at[:n].set(A)
    return Ap.T.reshape(3, n_pad // LANES, LANES)


def solver_forward(X, DX, x, dx, *, tile_sublanes=64):
    """X: (N,3) positions, DX: (N,3) raw directions, x: (3,), dx: (3,)."""
    N = X.shape[0]
    X = X.astype(jnp.float32)
    DX = DX.astype(jnp.float32)
    x = x.astype(jnp.float32)
    dx = dx.astype(jnp.float32)

    # Normalize the rock direction once (3 scalars) outside the grid loop.
    dx_n = dx / jnp.maximum(jnp.linalg.norm(dx), EPS)

    # Tile sizing: tile_m sublane rows of 128 hailstones each per grid step.
    m_needed = -(-N // LANES)                                # ceil(N / 128)
    tile_m = min(tile_sublanes, max(8, ((m_needed + 7) // 8) * 8))
    n_per_tile = tile_m * LANES
    n_pad = ((N + n_per_tile - 1) // n_per_tile) * n_per_tile
    grid_n = n_pad // n_per_tile

    Xc = _coord_major(X, n_pad)      # (3, grid_n * tile_m, 128)
    DXc = _coord_major(DX, n_pad)

    smem_spec = pl.BlockSpec(memory_space=pltpu.MemorySpace.SMEM)
    slab_spec = pl.BlockSpec((3, tile_m, LANES), lambda i: (0, i, 0))

    out = pl.pallas_call(
        solver_kernel,
        out_shape=jax.ShapeDtypeStruct((1, 1), jnp.float32),
        grid_spec=pltpu.PrefetchScalarGridSpec(
            num_scalar_prefetch=0,
            grid=(grid_n,),
            in_specs=[smem_spec, smem_spec, slab_spec, slab_spec],
            out_specs=pl.BlockSpec((1, 1), lambda i: (0, 0)),
            scratch_shapes=[pltpu.VMEM((tile_m, LANES), jnp.float32)],
        ),
        compiler_params=pltpu.CompilerParams(
            dimension_semantics=("arbitrary",)),
    )(x, dx_n, Xc, DXc)
    return out[0, 0]  # scalar, matching the torch forward's 0-d output


def reference_forward(X, DX, x, dx):
    """Plain-JAX reference of Solver.forward for verification."""
    X = X.astype(jnp.float32)
    DX = DX.astype(jnp.float32)
    DXn = DX / jnp.linalg.norm(DX, axis=1, keepdims=True)
    _dx = dx / jnp.maximum(jnp.linalg.norm(dx), EPS)
    cr = jnp.cross(DXn, jnp.broadcast_to(_dx, DXn.shape))
    normals = cr / jnp.maximum(
        jnp.linalg.norm(cr, axis=1, keepdims=True), EPS)
    d1 = jnp.sum(normals * X, axis=1)
    d2 = jnp.sum(normals * x, axis=1)
    return jnp.sum((d1 - d2) ** 2)


if __name__ == "__main__":
    key = jax.random.PRNGKey(0)
    k1, k2, k3, k4 = jax.random.split(key, 4)

    N = 8  # number of hailstones (synthetic, small)
    # Synthetic hailstones: integer-ish positions and non-degenerate directions.
    X = jnp.round(jax.random.uniform(k1, (N, 3), minval=1.0, maxval=50.0))
    DX = jnp.round(jax.random.uniform(k2, (N, 3), minval=-5.0, maxval=5.0))
    DX = jnp.where(jnp.abs(DX) < 1.0, 1.0, DX)  # avoid zero components

    # Parameters, deterministic init mirroring the torch __init__:
    #   x  = randn(3) + X.mean(axis=0),  dx = randn(3)
    x = jax.random.normal(k3, (3,), dtype=jnp.float32) + X.mean(axis=0)
    dx = jax.random.normal(k4, (3,), dtype=jnp.float32)

    out = jax.block_until_ready(solver_forward(X, DX, x, dx))
    ref = jax.block_until_ready(reference_forward(X, DX, x, dx))

    assert np.isfinite(float(out))
    np.testing.assert_allclose(float(out), float(ref), rtol=1e-4, atol=1e-4)
    print("KERNEL_OK")
</pallas_src>

<mosaic_0001>
module attributes {stable_mosaic.version = 11 : i64} {
  func.func @solver_kernel(%arg0: i32, %arg1: memref<3xf32, #tpu.memory_space<smem>>, %arg2: memref<3xf32, #tpu.memory_space<smem>>, %arg3: memref<3x8x128xf32, #tpu.memory_space<vmem>>, %arg4: memref<3x8x128xf32, #tpu.memory_space<vmem>>, %arg5: memref<1x1xf32, #tpu.memory_space<vmem>>, %arg6: memref<8x128xf32, #tpu.memory_space<vmem>>) attributes {dimension_semantics = [#tpu.dimension_semantics<arbitrary>], iteration_bounds = array<i64: 1>, scalar_prefetch = 0 : i64, scratch_operands = 1 : i64, tpu.core_type = #tpu.core_type<tc>, window_params = [{transform_indices = @transform_0, window_bounds = array<i64: 3>}, {transform_indices = @transform_1, window_bounds = array<i64: 3>}, {transform_indices = @transform_2, window_bounds = array<i64: 3, 8, 128>}, {transform_indices = @transform_3, window_bounds = array<i64: 3, 8, 128>}, {pipeline_mode = #tpu.pipeline_mode<synchronous>, transform_indices = @transform_4, window_bounds = array<i64: 1, 1>}]} {
    %c0_i32 = arith.constant 0 : i32
    %0 = arith.cmpi eq, %arg0, %c0_i32 : i32
    %1 = arith.extui %0 : i1 to i32
    %c0_i32_0 = arith.constant 0 : i32
    %2 = arith.cmpi ne, %1, %c0_i32_0 : i32
    scf.if %2 {
      %cst_28 = arith.constant 0.000000e+00 : f32
      %63 = vector.broadcast %cst_28 : f32 to vector<8x128xf32>
      %c0_29 = arith.constant 0 : index
      %c0_30 = arith.constant 0 : index
      %64 = vector.load %arg6[%c0_29, %c0_30] : memref<8x128xf32, #tpu.memory_space<vmem>>, vector<8x128xf32>
      tpu.vector_store %arg6[%c0_29, %c0_30], %63 {strides = array<i32>} : memref<8x128xf32, #tpu.memory_space<vmem>>, vector<8x128xf32>,
    } else {
    }
    %c0 = arith.constant 0 : index
    %3 = memref.load %arg2[%c0] : memref<3xf32, #tpu.memory_space<smem>>
    %c1 = arith.constant 1 : index
    %4 = memref.load %arg2[%c1] : memref<3xf32, #tpu.memory_space<smem>>
    %c2 = arith.constant 2 : index
    %5 = memref.load %arg2[%c2] : memref<3xf32, #tpu.memory_space<smem>>
    %c0_1 = arith.constant 0 : index
    %6 = memref.load %arg1[%c0_1] : memref<3xf32, #tpu.memory_space<smem>>
    %c1_2 = arith.constant 1 : index
    %7 = memref.load %arg1[%c1_2] : memref<3xf32, #tpu.memory_space<smem>>
    %c2_3 = arith.constant 2 : index
    %8 = memref.load %arg1[%c2_3] : memref<3xf32, #tpu.memory_space<smem>>
    %c0_4 = arith.constant 0 : index
    %c0_5 = arith.constant 0 : index
    %c0_6 = arith.constant 0 : index
    %9 = vector.load %arg4[%c0_4, %c0_5, %c0_6] : memref<3x8x128xf32, #tpu.memory_space<vmem>>, vector<1x8x128xf32>
    %10 = vector.shape_cast %9 : vector<1x8x128xf32> to vector<8x128xf32>
    %c1_7 = arith.constant 1 : index
    %c0_8 = arith.constant 0 : index
    %c0_9 = arith.constant 0 : index
    %11 = vector.load %arg4[%c1_7, %c0_8, %c0_9] : memref<3x8x128xf32, #tpu.memory_space<vmem>>, vector<1x8x128xf32>
    %12 = vector.shape_cast %11 : vector<1x8x128xf32> to vector<8x128xf32>
    %c2_10 = arith.constant 2 : index
    %c0_11 = arith.constant 0 : index
    %c0_12 = arith.constant 0 : index
    %13 = vector.load %arg4[%c2_10, %c0_11, %c0_12] : memref<3x8x128xf32, #tpu.memory_space<vmem>>, vector<1x8x128xf32>
    %14 = vector.shape_cast %13 : vector<1x8x128xf32> to vector<8x128xf32>
    %15 = vector.broadcast %5 : f32 to vector<8x128xf32>
    %16 = arith.mulf %12, %15 : vector<8x128xf32>
    %17 = vector.broadcast %4 : f32 to vector<8x128xf32>
    %18 = arith.mulf %14, %17 : vector<8x128xf32>
    %19 = arith.subf %16, %18 : vector<8x128xf32>
    %20 = vector.broadcast %3 : f32 to vector<8x128xf32>
    %21 = arith.mulf %14, %20 : vector<8x128xf32>
    %22 = vector.broadcast %5 : f32 to vector<8x128xf32>
    %23 = arith.mulf %10, %22 : vector<8x128xf32>
    %24 = arith.subf %21, %23 : vector<8x128xf32>
    %25 = vector.broadcast %4 : f32 to vector<8x128xf32>
    %26 = arith.mulf %10, %25 : vector<8x128xf32>
    %27 = vector.broadcast %3 : f32 to vector<8x128xf32>
    %28 = arith.mulf %12, %27 : vector<8x128xf32>
    %29 = arith.subf %26, %28 : vector<8x128xf32>
    %30 = arith.mulf %19, %19 : vector<8x128xf32>
    %31 = arith.mulf %24, %24 : vector<8x128xf32>
    %32 = arith.addf %30, %31 : vector<8x128xf32>
    %33 = arith.mulf %29, %29 : vector<8x128xf32>
    %34 = arith.addf %32, %33 : vector<8x128xf32>
    %cst = arith.constant 9.99999996E-13 : f32
    %35 = vector.broadcast %cst : f32 to vector<8x128xf32>
    %36 = arith.addf %34, %35 : vector<8x128xf32>
    %37 = math.rsqrt %36 : vector<8x128xf32>
    %c0_13 = arith.constant 0 : index
    %c0_14 = arith.constant 0 : index
    %c0_15 = arith.constant 0 : index
    %38 = vector.load %arg3[%c0_13, %c0_14, %c0_15] : memref<3x8x128xf32, #tpu.memory_space<vmem>>, vector<1x8x128xf32>
    %39 = vector.shape_cast %38 : vector<1x8x128xf32> to vector<8x128xf32>
    %40 = vector.broadcast %6 : f32 to vector<8x128xf32>
    %41 = arith.subf %39, %40 : vector<8x128xf32>
    %42 = arith.mulf %19, %41 : vector<8x128xf32>
    %c1_16 = arith.constant 1 : index
    %c0_17 = arith.constant 0 : index
    %c0_18 = arith.constant 0 : index
    %43 = vector.load %arg3[%c1_16, %c0_17, %c0_18] : memref<3x8x128xf32, #tpu.memory_space<vmem>>, vector<1x8x128xf32>
    %44 = vector.shape_cast %43 : vector<1x8x128xf32> to vector<8x128xf32>
    %45 = vector.broadcast %7 : f32 to vector<8x128xf32>
    %46 = arith.subf %44, %45 : vector<8x128xf32>
    %47 = arith.mulf %24, %46 : vector<8x128xf32>
    %48 = arith.addf %42, %47 : vector<8x128xf32>
    %c2_19 = arith.constant 2 : index
    %c0_20 = arith.constant 0 : index
    %c0_21 = arith.constant 0 : index
    %49 = vector.load %arg3[%c2_19, %c0_20, %c0_21] : memref<3x8x128xf32, #tpu.memory_space<vmem>>, vector<1x8x128xf32>
    %50 = vector.shape_cast %49 : vector<1x8x128xf32> to vector<8x128xf32>
    %51 = vector.broadcast %8 : f32 to vector<8x128xf32>
    %52 = arith.subf %50, %51 : vector<8x128xf32>
    %53 = arith.mulf %29, %52 : vector<8x128xf32>
    %54 = arith.addf %48, %53 : vector<8x128xf32>
    %55 = arith.mulf %54, %37 : vector<8x128xf32>
    %c0_22 = arith.constant 0 : index
    %c0_23 = arith.constant 0 : index
    %56 = vector.load %arg6[%c0_22, %c0_23] : memref<8x128xf32, #tpu.memory_space<vmem>>, vector<8x128xf32>
    %57 = arith.mulf %55, %55 : vector<8x128xf32>
    %58 = arith.addf %56, %57 : vector<8x128xf32>
    %c0_24 = arith.constant 0 : index
    %c0_25 = arith.constant 0 : index
    %59 = vector.load %arg6[%c0_24, %c0_25] : memref<8x128xf32, #tpu.memory_space<vmem>>, vector<8x128xf32>
    tpu.vector_store %arg6[%c0_24, %c0_25], %58 {strides = array<i32>} : memref<8x128xf32, #tpu.memory_space<vmem>>, vector<8x128xf32>,
    %c0_i32_26 = arith.constant 0 : i32
    %60 = arith.cmpi eq, %arg0, %c0_i32_26 : i32
    %61 = arith.extui %60 : i1 to i32
    %c0_i32_27 = arith.constant 0 : i32
    %62 = arith.cmpi ne, %61, %c0_i32_27 : i32
    scf.if %62 {
      %c0_28 = arith.constant 0 : index
      %c0_29 = arith.constant 0 : index
      %63 = vector.load %arg6[%c0_28, %c0_29] : memref<8x128xf32, #tpu.memory_space<vmem>>, vector<8x128xf32>
      %64 = vector.shape_cast %63 : vector<8x128xf32> to vector<1x8x128xf32>
      %cst_30 = arith.constant dense<0.000000e+00> : vector<1xf32>
      %65 = vector.multi_reduction <add>, %64, %cst_30 [1, 2] : vector<1x8x128xf32> to vector<1xf32>
      %66 = vector.shape_cast %65 : vector<1xf32> to vector<1x1x1xf32>
      %67 = vector.extract %66[0, 0, 0] : f32 from vector<1x1x1xf32>
      %68 = vector.broadcast %67 : f32 to vector<1x1xf32>
      %c0_31 = arith.constant 0 : index
      %c0_32 = arith.constant 0 : index
      %69 = vector.load %arg5[%c0_31, %c0_32] : memref<1x1xf32, #tpu.memory_space<vmem>>, vector<1x1xf32>
      tpu.vector_store %arg5[%c0_31, %c0_32], %68 {strides = array<i32>} : memref<1x1xf32, #tpu.memory_space<vmem>>, vector<1x1xf32>,
    } else {
    }
    return
  }
  func.func @transform_0(%arg0: i32) -> i32 {
    %c0_i32 = arith.constant 0 : i32
    %c0_i32_0 = arith.constant 0 : i32
    return %c0_i32 : i32
  }
  func.func @transform_1(%arg0: i32) -> i32 {
    %c0_i32 = arith.constant 0 : i32
    %c0_i32_0 = arith.constant 0 : i32
    return %c0_i32 : i32
  }
  func.func @transform_2(%arg0: i32) -> (i32, i32, i32) {
    %c0_i32 = arith.constant 0 : i32
    %c0_i32_0 = arith.constant 0 : i32
    %c0_i32_1 = arith.constant 0 : i32
    return %c0_i32, %arg0, %c0_i32_0 : i32, i32, i32
  }
  func.func @transform_3(%arg0: i32) -> (i32, i32, i32) {
    %c0_i32 = arith.constant 0 : i32
    %c0_i32_0 = arith.constant 0 : i32
    %c0_i32_1 = arith.constant 0 : i32
    return %c0_i32, %arg0, %c0_i32_0 : i32, i32, i32
  }
  func.func @transform_4(%arg0: i32) -> (i32, i32) {
    %c0_i32 = arith.constant 0 : i32
    %c0_i32_0 = arith.constant 0 : i32
    %c0_i32_1 = arith.constant 0 : i32
    return %c0_i32, %c0_i32_0 : i32, i32
  }
}

</mosaic_0001>

<bundles_post_ra>
// kernel: tpu_custom_call.1
= control target key start
LH: loop header
LB: loop body
LE: loop exit
PB: predicated region body
PF: predicated region fallthrough
CT: control target
= control target key end

     0   :  { %9 = vsyncpa [#allocation6], 0  ;;  %s355_s0 = inlined_call_operand.hbm [shape: f32[3], index: 0, kind: input, shape index: {}]   ;;  %s356_s1 = inlined_call_operand.vmem [shape: f32[3], index: 1, kind: input, shape index: {}]   ;;  %s357_s2 = inlined_call_operand.hbm [shape: f32[3,8,128], index: 2, kind: input, shape index: {}]   ;;  %s358_s3 = inlined_call_operand.hbm [shape: f32[3,8,128], index: 3, kind: input, shape index: {}]   ;;  %s359_s4 = inlined_call_operand.hbm [shape: f32[1,1], index: 4, kind: output, shape index: {}]  }
   0x1   :  { %10 = vsyncpa [#allocation7], 0 }
   0x2   :  { %11 = vsyncpa [#allocation4], 0 }
   0x3   :  { %12 = vsyncpa [#allocation11], 0 }
   0x4   :  { %13 = vsyncpa [#allocation5], 0  ;;  %s28_s17 = sshll.u32 %s356_s1, 4  ;;  %s174_s20 = scalar_lea.hbm %s355_s0, 16  ;;  %s29_s17 = int_to_ptr.vmem [resolvable:$true] %s28_s17 }
   0x5   :  { %p175_p0 = scmp.ne.s32.totalorder %s355_s0, %s174_s20  ;;  %p178_p1 = scmp.lt.u32.totalorder %s174_s20, %s355_s0 }
   0x7   :  { %p180_p2 = pnand %p178_p1, %p175_p0 }
   0x9   :  { %183 = shalt.err (!%p180_p2)
}
   0xa   :  { %s272_s25 = smov [#allocation3]   ;;  %s184_s1 = scalar_lea.vmem %s29_s17, 16 }
   0xb   :  { %21 = dma.hbm_to_smem %s355_s0, 16, %s272_s25, [#allocation6]  }
   0xc   :  { %p185_p3 = scmp.ne.s32.totalorder %s29_s17, %s184_s1  ;;  %p189_p4 = scmp.lt.s32.totalorder %s29_s17, %s29_s17 }
   0xd   :  { %p190_p5 = scmp.lt.s32.totalorder %s184_s1, %s184_s1 }
   0xf   :  { %p191_p6 = por %p190_p5, %p189_p4 }
  0x11   :  { %p192_p7 = pnand %p191_p6, %p185_p3 }
  0x13   :  { %195 = shalt.err (!%p192_p7)
}
  0x14   :  { %s273_s28 = smov [#allocation8]   ;;  %s274_s29 = smov [#allocation9]  }
  0x15   :  { %31 = dma.vmem_to_smem %s29_s17, 16, %s273_s28, [#allocation7]  }
  0x16   :  { %s37_s30 = sshll.u32 %s274_s29, 4  ;;  %s196_s7 = scalar_lea.hbm %s357_s2, 384  ;;  %s38_s30 = int_to_ptr.vmem [resolvable:$true] %s37_s30 }
  0x17   :  { %p197_p8 = scmp.ne.s32.totalorder %s357_s2, %s196_s7  ;;  %p200_p9 = scmp.lt.u32.totalorder %s196_s7, %s357_s2 }
  0x19   :  { %p202_p10 = pnand %p200_p9, %p197_p8 }
  0x1b   :  { %205 = shalt.err (!%p202_p10)
}
  0x1c   :  { %s206_s11 = scalar_lea.vmem %s38_s30, 384  ;;  %p211_p12 = scmp.lt.s32.totalorder %s38_s30, %s38_s30 }
  0x1d   :  { %p207_p11 = scmp.ne.s32.totalorder %s38_s30, %s206_s11  ;;  %p212_p13 = scmp.lt.s32.totalorder %s206_s11, %s206_s11 }
  0x1f   :  { %p213_p0 = por %p212_p13, %p211_p12 }
  0x21   :  { %p214_p1 = pnand %p213_p0, %p207_p11 }
  0x23   :  { %217 = shalt.err (!%p214_p1)
}
  0x24   :  { %s275_s12 = smov 128   ;;  %s276_s13 = smov 8  }
  0x25   :  { %43 = dma.hbm_to_vmem [thread:$0]  %s357_s2, 384, %s38_s30, [#allocation4], %s275_s12, %s275_s12, %s276_s13  }
  0x26   :  { %s277_s16 = smov [#allocation10]   ;;  %s218_s20 = scalar_lea.hbm %s358_s3, 384 }
  0x27   :  { %s49_s17 = sshll.u32 %s277_s16, 4  ;;  %p219_p2 = scmp.ne.s32.totalorder %s358_s3, %s218_s20  ;;  %s50_s17 = int_to_ptr.vmem [resolvable:$true] %s49_s17 }
  0x28   :  { %p222_p3 = scmp.lt.u32.totalorder %s218_s20, %s358_s3 }
  0x2a   :  { %p224_p4 = pnand %p222_p3, %p219_p2 }
  0x2c   :  { %227 = shalt.err (!%p224_p4)
}
  0x2d   :  { %s228_s25 = scalar_lea.vmem %s50_s17, 384  ;;  %p233_p6 = scmp.lt.s32.totalorder %s50_s17, %s50_s17 }
  0x2e   :  { %p229_p5 = scmp.ne.s32.totalorder %s50_s17, %s228_s25  ;;  %p234_p7 = scmp.lt.s32.totalorder %s228_s25, %s228_s25 }
  0x30   :  { %p235_p8 = por %p234_p7, %p233_p6 }
  0x32   :  { %p236_p9 = pnand %p235_p8, %p229_p5 }
  0x34   :  { %239 = shalt.err (!%p236_p9)
}
  0x35   :  { %55 = dma.hbm_to_vmem [thread:$0]  %s358_s3, 384, %s50_s17, [#allocation11], %s275_s12, %s275_s12, %s276_s13  }
  0x36   :  { %262 = dma.done.wait [#allocation6], 16  }
  0x37   :  { %263 = vsyncadd [#allocation6], 4294967280 }
  0x38   :  { %264 = dma.done.wait [#allocation7], 16  }
  0x39   :  { %265 = vsyncadd [#allocation7], 4294967280 }
  0x3a   :  { %266 = dma.done.wait [#allocation4], 384  }
  0x3b   :  { %267 = vsyncadd [#allocation4], 4294966912 }
  0x3c   :  { %268 = dma.done.wait [#allocation11], 384  }
  0x3d   :  { %269 = vsyncadd [#allocation11], 4294966912 }
  0x3e   :  { %68 = sfence }
  0x3f   :  { %s74_s27 = sld [smem:[#allocation8]]  ;;  %s159_s1 = sld [smem:[#allocation8 + $0x1]]  ;;  %v84_v0 = vld [vmem:[#allocation10 + $0x10] sm:$0xff]  ;;  %v80_v1 = vld [vmem:[#allocation10] sm:$0xff]  ;;  %v82_v2 = vld [vmem:[#allocation10 + $0x8] sm:$0xff]  ;;  %vm139_vm0 = vcmask 0  }
  0x40   :  { %s160_s28 = sld [smem:[#allocation8 + $0x2]]  ;;  %s77_s29 = sld [smem:[#allocation3]]  ;;  %v104_v19 = vld [vmem:[#allocation9] sm:$0xff]  ;;  %v109_v20 = vld [vmem:[#allocation9 + $0x8] sm:$0xff]  ;;  %v115_v26 = vld [vmem:[#allocation9 + $0x10] sm:$0xff] }
  0x41   :  { %s161_s30 = sld [smem:[#allocation3 + $0x1]]  ;;  %s162_s3 = sld [smem:[#allocation3 + $0x2]] }
  0x42   :  { %s278_s5 = smov [#allocation12]  }
  0x43   :  { %s147_s6 = sshll.u32 %s278_s5, 4  ;;  %s148_s6 = int_to_ptr.vmem [resolvable:$true] %s147_s6 }
  0x44   :  { %s240_s8 = scalar_lea.vmem %s148_s6, 16  ;;  %s244_s9 = scalar_lea.vmem %s148_s6, 32 }
  0x45   :  { %v87_v3 = vstv %s159_s1  ;;  %v90_v4 = vstv %s74_s27  ;;  %p241_p10 = scmp.ne.s32.totalorder %s148_s6, %s240_s8  ;;  %p245_p11 = scmp.lt.s32.totalorder %s148_s6, %s148_s6 }
  0x46   :  { %v85_v5 = vstv %s160_s28  ;;  %v88_v6 = vmul.f32 %v87_v3, %v84_v0  ;;  %v91_v7 = vmul.f32 %v90_v4, %v84_v0  ;;  %v94_v8 = vmul.f32 %v87_v3, %v80_v1  ;;  %p246_p12 = scmp.lt.s32.totalorder %s244_s9, %s240_s8 }
  0x47   :  { %v86_v9 = vmul.f32 %v85_v5, %v82_v2  ;;  %v92_v10 = vmul.f32 %v85_v5, %v80_v1  ;;  %v95_v11 = vmul.f32 %v90_v4, %v82_v2  ;;  %v105_v15 = vstv %s77_s29 }
  0x48   :  { %v110_v21 = vstv %s161_s30  ;;  %v106_v23 = vsub.f32 %v104_v19, %v105_v15  ;;  %v116_v27 = vstv %s162_s3  ;;  %p247_p13 = por %p246_p12, %p245_p11 }
  0x49   :  { %v89_v12 = vsub.f32 %v86_v9, %v88_v6  ;;  %v93_v13 = vsub.f32 %v91_v7, %v92_v10  ;;  %v96_v14 = vsub.f32 %v94_v8, %v95_v11  ;;  %v111_v24 = vsub.f32 %v109_v20, %v110_v21 }
  0x4a   :  { %v117_v31 = vsub.f32 %v115_v26, %v116_v27  ;;  %p248_p0 = pnand %p247_p13, %p241_p10 }
  0x4b   :  { %v97_v16 = vmul.f32 %v89_v12, %v89_v12  ;;  %v98_v17 = vmul.f32 %v93_v13, %v93_v13  ;;  %v100_v18 = vmul.f32 %v96_v14, %v96_v14  ;;  %v107_v29 = vmul.f32 %v106_v23, %v89_v12 }
  0x4c   :  { %v112_v30 = vmul.f32 %v111_v24, %v93_v13  ;;  %v118_v33 = vmul.f32 %v117_v31, %v96_v14 }
  0x4d   :  { %v99_v22 = vadd.f32 %v98_v17, %v97_v16 }
  0x4e   :  { %v113_v32 = vadd.f32 %v112_v30, %v107_v29 }
  0x4f   :  { %v101_v25 = vadd.f32 %v100_v18, %v99_v22 }
  0x50   :  { %v119_v34 = vadd.f32 %v118_v33, %v113_v32 }
  0x51   :  { %v102_v28 = vadd.f32 1e-12, %v101_v25 }
  0x53   :  { %172 = vrsqrt.f32 %v102_v28 }
  0x5d   :  { %v173_v35 = vpop.eup %172 }
  0x5e   :  { %v120_v36 = vmul.f32 %v173_v35, %v119_v34 }
  0x60   :  { %v122_v37 = vmul.f32 %v120_v36, %v120_v36 }
  0x62   :  { %129 = vadd.xlane.f32.xlu0 %v122_v37 }
  0xef   :  { %v130_v38 = vpop.xlane.xlu0 %129 }
  0xf0   :  { %v131_v39 = vrot.slane %v130_v38, 4 }
  0xf2   :  { %v132_v40 = vadd.f32 %v131_v39, %v130_v38 }
  0xf4   :  { %v133_v41 = vrot.slane %v132_v40, 2 }
  0xf6   :  { %v134_v42 = vadd.f32 %v133_v41, %v132_v40 }
  0xf8   :  { %v135_v43 = vrot.slane %v134_v42, 1 }
  0xfa   :  { %v136_v44 = vadd.f32 %v135_v43, %v134_v42 }
  0xfc   :  { %163 = vpush %v136_v44 }
 0x12d   :  { %s164_s7 = spop %163 }
 0x12e   :  { %v138_v45 = vstv %s164_s7 }
 0x12f   :  { %140 = vst.msk [vmem:[#allocation12] sm:$0x1] %vm139_vm0, %v138_v45 }
 0x130   :  { %251 = shalt.err (!%p248_p0)
}
 0x131   :  { %s252_s11 = scalar_lea.hbm %s359_s4, 16 }
 0x132   :  { %p253_p1 = scmp.ne.s32.totalorder %s359_s4, %s252_s11  ;;  %p256_p2 = scmp.lt.u32.totalorder %s252_s11, %s359_s4 }
 0x134   :  { %p258_p3 = pnand %p256_p2, %p253_p1 }
 0x136   :  { %261 = shalt.err (!%p258_p3)
}
 0x137   :  { %150 = dma.vmem_to_hbm [thread:$0]  %s148_s6, 16, %s359_s4, [#allocation5]  }
 0x138   :  { %270 = dma.done.wait [#allocation5], 16  }
 0x139   :  { %271 = vsyncadd [#allocation5], 4294967280 }
 0x13a   :  { %154 = vsyncpa [#allocation4], 1 }
 0x13b   :  { %155 = vsyncpa [#allocation11], 1 }
 0x13c   :  { %156 = vsyncpa [#allocation5], 1 }
 0x13d   :  { %157 = vsyncpa [#allocation6], 1 }
 0x13e   :  { %158 = vsyncpa [#allocation7], 1 }

</bundles_post_ra>
